<compile_context>
chip_gen: v7x
topology: tpu7x:2x2x1
jax: 0.10.0
libtpu: 0.0.40
codegen_flags: <defaults>
</compile_context>

<pallas_src>
import functools

import jax
import jax.numpy as jnp
from jax.experimental import pallas as pl
from jax.experimental.pallas import tpu as pltpu


def _round_up(x: int, m: int) -> int:
    return ((x + m - 1) // m) * m


def _ordinal_loss_kernel(pred_ref, tgt_ref, out_ref, *, batch, n_cats):
    """One batch tile of GPCM ordinal-loss partial sums.

    pred_ref: (K, R, 128) probabilities (native dtype, cast to f32 here).
    tgt_ref:  (R, 128) int32 targets.
    out_ref:  (1, 8, 128) f32 per-tile partial sum of the log terms.
    """
    i = pl.program_id(0)
    p = pred_ref[...].astype(jnp.float32)            # (K, R, 128) dense slabs
    tgt = tgt_ref[...]                               # (R, 128) int32
    _, r, lanes = p.shape
    eps = jnp.float32(1e-9)

    # Elements past the true batch size are zero padding; mask them at the end.
    row = jax.lax.broadcasted_iota(jnp.int32, (r, lanes), 0)
    lane = jax.lax.broadcasted_iota(jnp.int32, (r, lanes), 1)
    valid = ((i * r + row) * lanes + lane) < batch   # (R, 128) bool

    contrib = jnp.zeros((r, lanes), jnp.float32)
    cum = p[0]                                       # running cumulative prob
    pending = None
    for k in range(n_cats):                          # K is small & static -> unrolled
        if k > 0:
            # Exact sequential (left-fold) cumsum, matches torch.cumsum association.
            cum = cum + p[k]
        sel = tgt >= k                               # mask[b, k] = (k <= target_b)
        # Single eps add; the max() clamp guards fp rounding pushing cum above 1
        # (raw torch expression would give NaN there) and is a no-op for cum>=0.
        arg = jnp.maximum(jnp.where(sel, cum, 1.0 - cum), 0.0) + eps
        # Pairwise log folding: halves the EUP log count for one extra VPU mul.
        # args >= eps, so the pairwise product >= 1e-18 stays normal in f32.
        if pending is None:
            pending = arg
        else:
            contrib = contrib + jnp.log(pending * arg)
            pending = None
    if pending is not None:                          # odd K remainder
        contrib = contrib + jnp.log(pending)

    contrib = jnp.where(valid, contrib, 0.0)
    # Fold (R,128) -> (8,128) with pure VPU adds (reshape aligns with (8,128)
    # tiles, so no relayout); the single cross-lane reduce runs in the wrapper.
    out_ref[...] = contrib.reshape(-1, 8, lanes).sum(axis=0).reshape(1, 8, lanes)


def ordinal_loss(predictions: jnp.ndarray, targets: jnp.ndarray, *, tile_b: int = 32768) -> jnp.ndarray:
    """Pallas implementation of OrdinalLoss.forward.

    Args:
        predictions: (batch_size, n_cats) predicted probabilities (any float dtype).
        targets: (batch_size,) integer labels.
        tile_b: batch-tile width in lanes (rounded to a multiple of 1024 and
            capped so the double-buffered working set stays ~8 MiB).
    Returns:
        Scalar float32 loss.
    """
    B, K = predictions.shape

    # --- tile sizing -------------------------------------------------------
    bytes_per_lane = K * predictions.dtype.itemsize + 4          # pred column + target
    max_tb = max(1024, ((8 * 1024 * 1024) // (2 * bytes_per_lane) // 1024) * 1024)
    tile_b = max(1024, _round_up(tile_b, 1024))
    tile_b = min(tile_b, max_tb)
    tb = min(tile_b, _round_up(B, 1024))
    n_tiles = (B + tb - 1) // tb
    b_pad = n_tiles * tb
    rows = b_pad // 128                                          # total 128-lane rows
    r = tb // 128                                                # rows per tile (multiple of 8)

    # --- lane-dense layout: batch on lanes, categories on the leading axis --
    # (transpose + pad are a single fused XLA copy; reshape is free.)
    pred_t = jnp.pad(predictions.T, ((0, 0), (0, b_pad - B))).reshape(K, rows, 128)
    tgt_t = jnp.pad(targets.astype(jnp.int32), (0, b_pad - B)).reshape(rows, 128)

    kernel = functools.partial(_ordinal_loss_kernel, batch=B, n_cats=K)

    partials = pl.pallas_call(
        kernel,
        out_shape=jax.ShapeDtypeStruct((n_tiles, 8, 128), jnp.float32),
        grid_spec=pltpu.PrefetchScalarGridSpec(
            num_scalar_prefetch=0,
            grid=(n_tiles,),
            in_specs=[
                pl.BlockSpec((K, r, 128), lambda i: (0, i, 0)),   # predictions tile
                pl.BlockSpec((r, 128), lambda i: (i, 0)),         # targets tile
            ],
            out_specs=pl.BlockSpec((1, 8, 128), lambda i: (i, 0, 0)),
        ),
        compiler_params=pltpu.CompilerParams(
            dimension_semantics=("parallel",),       # independent per-tile partials
            vmem_limit_bytes=32 * 1024 * 1024,       # safe on v5e/v6e/v7x
        ),
        cost_estimate=pl.CostEstimate(
            flops=8 * B * K,
            transcendentals=B * ((K + 1) // 2),
            bytes_accessed=predictions.dtype.itemsize * B * K + 4 * B + 4 * n_tiles * 1024,
        ),
    )(pred_t, tgt_t)

    # Tiny final reduction + scaling in XLA.
    return jnp.sum(partials) * jnp.float32(-1.0 / (B * (K - 1)))


def _reference(predictions, targets):
    """Pure-JAX mirror of PyTorch OrdinalLoss.forward.

    torch.cumsum is written as an explicit left fold so the association matches
    the kernel bit-for-bit.  max(1-cum, 0) guards the degenerate fp case
    cum > 1 (where the raw torch expression returns NaN).
    """
    B, K = predictions.shape
    p = predictions.astype(jnp.float32)
    cols = [p[:, 0]]
    for k in range(1, K):
        cols.append(cols[-1] + p[:, k])
    cum = jnp.stack(cols, axis=1)                             # (B, K)
    mask = jnp.arange(K)[None, :] <= targets[:, None]         # (B, K) bool
    eps = 1e-9
    pos = jnp.log(cum + eps)
    neg = jnp.log(jnp.maximum(1.0 - cum, 0.0) + eps)
    loss = -jnp.sum(jnp.where(mask, pos, neg))
    return loss / (B * (K - 1))


if __name__ == "__main__":
    key = jax.random.PRNGKey(0)
    k1, k2, k3, k4, k5, k6 = jax.random.split(key, 6)

    # 1) Small shape implied by the module: batch=8 rows of K=4 GPCM probabilities.
    batch_size, n_cats = 8, 4
    predictions = jax.nn.softmax(
        jax.random.normal(k1, (batch_size, n_cats), dtype=jnp.float32), axis=-1)
    targets = jax.random.randint(k2, (batch_size,), 0, n_cats, dtype=jnp.int32)
    loss = jax.block_until_ready(ordinal_loss(predictions, targets))
    ref = _reference(predictions, targets)
    assert jnp.isfinite(loss), loss
    assert jnp.allclose(loss, ref, rtol=1e-4, atol=1e-5), (loss, ref)

    # 2) Odd K (exercises the pairwise-log remainder) + ragged padding path.
    batch2, n_cats2 = 300, 6
    preds2 = jax.nn.softmax(
        jax.random.normal(k3, (batch2, n_cats2), dtype=jnp.float32), axis=-1)
    tgts2 = jax.random.randint(k4, (batch2,), 0, n_cats2, dtype=jnp.int32)
    loss2 = jax.block_until_ready(ordinal_loss(preds2, tgts2))
    ref2 = _reference(preds2, tgts2)
    assert jnp.isfinite(loss2), loss2
    assert jnp.allclose(loss2, ref2, rtol=1e-4, atol=1e-4), (loss2, ref2)

    # 3) Multi-tile grid (3 tiles of 1024 lanes) with per-tile partials.
    batch3, n_cats3 = 2500, 5
    preds3 = jax.nn.softmax(
        jax.random.normal(k5, (batch3, n_cats3), dtype=jnp.float32), axis=-1)
    tgts3 = jax.random.randint(k6, (batch3,), 0, n_cats3, dtype=jnp.int32)
    loss3 = jax.block_until_ready(ordinal_loss(preds3, tgts3, tile_b=1024))
    ref3 = _reference(preds3, tgts3)
    assert jnp.isfinite(loss3), loss3
    assert jnp.allclose(loss3, ref3, rtol=1e-4, atol=1e-4), (loss3, ref3)

    print("KERNEL_OK")
</pallas_src>

<mosaic_0001>
module attributes {stable_mosaic.version = 11 : i64} {
  func.func @_ordinal_loss_kernel(%arg0: i32, %arg1: memref<4x8x128xf32, #tpu.memory_space<vmem>>, %arg2: memref<8x128xi32, #tpu.memory_space<vmem>>, %arg3: memref<1x8x128xf32, #tpu.memory_space<vmem>>) attributes {dimension_semantics = [#tpu.dimension_semantics<parallel>], iteration_bounds = array<i64: 1>, scalar_prefetch = 0 : i64, scratch_operands = 0 : i64, tpu.core_type = #tpu.core_type<tc>, window_params = [{transform_indices = @transform_0, window_bounds = array<i64: 4, 8, 128>}, {transform_indices = @transform_1, window_bounds = array<i64: 8, 128>}, {transform_indices = @transform_2, window_bounds = array<i64: 1, 8, 128>}]} {
    %c0 = arith.constant 0 : index
    %c0_0 = arith.constant 0 : index
    %c0_1 = arith.constant 0 : index
    %0 = vector.load %arg1[%c0, %c0_0, %c0_1] : memref<4x8x128xf32, #tpu.memory_space<vmem>>, vector<4x8x128xf32>
    %c0_2 = arith.constant 0 : index
    %c0_3 = arith.constant 0 : index
    %1 = vector.load %arg2[%c0_2, %c0_3] : memref<8x128xi32, #tpu.memory_space<vmem>>, vector<8x128xi32>
    %2 = tpu.iota {dimensions = array<i32: 0>} : vector<8x128xi32>
    %3 = tpu.iota {dimensions = array<i32: 1>} : vector<8x128xi32>
    %c8_i32 = arith.constant 8 : i32
    %4 = arith.muli %arg0, %c8_i32 : i32
    %5 = vector.broadcast %4 : i32 to vector<8x128xi32>
    %6 = arith.addi %5, %2 : vector<8x128xi32>
    %c128_i32 = arith.constant 128 : i32
    %7 = vector.broadcast %c128_i32 : i32 to vector<8x128xi32>
    %8 = arith.muli %6, %7 : vector<8x128xi32>
    %9 = arith.addi %8, %3 : vector<8x128xi32>
    %c8_i32_4 = arith.constant 8 : i32
    %10 = vector.broadcast %c8_i32_4 : i32 to vector<8x128xi32>
    %11 = arith.cmpi slt, %9, %10 : vector<8x128xi32>
    %cst = arith.constant 0.000000e+00 : f32
    %12 = vector.broadcast %cst : f32 to vector<8x128xf32>
    %13 = vector.extract_strided_slice %0 {offsets = [0, 0, 0], sizes = [1, 8, 128], strides = [1, 1, 1]} : vector<4x8x128xf32> to vector<1x8x128xf32>
    %14 = vector.shape_cast %13 : vector<1x8x128xf32> to vector<8x128xf32>
    %c0_i32 = arith.constant 0 : i32
    %15 = vector.broadcast %c0_i32 : i32 to vector<8x128xi32>
    %16 = arith.cmpi sge, %1, %15 : vector<8x128xi32>
    %cst_5 = arith.constant 1.000000e+00 : f32
    %17 = vector.broadcast %cst_5 : f32 to vector<8x128xf32>
    %18 = arith.subf %17, %14 : vector<8x128xf32>
    %19 = arith.select %16, %14, %18 : vector<8x128xi1>, vector<8x128xf32>
    %cst_6 = arith.constant 0.000000e+00 : f32
    %20 = vector.broadcast %cst_6 : f32 to vector<8x128xf32>
    %21 = arith.maximumf %19, %20 : vector<8x128xf32>
    %cst_7 = arith.constant 9.99999971E-10 : f32
    %22 = vector.broadcast %cst_7 : f32 to vector<8x128xf32>
    %23 = arith.addf %21, %22 : vector<8x128xf32>
    %24 = vector.extract_strided_slice %0 {offsets = [1, 0, 0], sizes = [1, 8, 128], strides = [1, 1, 1]} : vector<4x8x128xf32> to vector<1x8x128xf32>
    %25 = vector.shape_cast %24 : vector<1x8x128xf32> to vector<8x128xf32>
    %26 = arith.addf %14, %25 : vector<8x128xf32>
    %c1_i32 = arith.constant 1 : i32
    %27 = vector.broadcast %c1_i32 : i32 to vector<8x128xi32>
    %28 = arith.cmpi sge, %1, %27 : vector<8x128xi32>
    %cst_8 = arith.constant 1.000000e+00 : f32
    %29 = vector.broadcast %cst_8 : f32 to vector<8x128xf32>
    %30 = arith.subf %29, %26 : vector<8x128xf32>
    %31 = arith.select %28, %26, %30 : vector<8x128xi1>, vector<8x128xf32>
    %cst_9 = arith.constant 0.000000e+00 : f32
    %32 = vector.broadcast %cst_9 : f32 to vector<8x128xf32>
    %33 = arith.maximumf %31, %32 : vector<8x128xf32>
    %cst_10 = arith.constant 9.99999971E-10 : f32
    %34 = vector.broadcast %cst_10 : f32 to vector<8x128xf32>
    %35 = arith.addf %33, %34 : vector<8x128xf32>
    %36 = arith.mulf %23, %35 : vector<8x128xf32>
    %37 = math.log %36 : vector<8x128xf32>
    %38 = arith.addf %12, %37 : vector<8x128xf32>
    %39 = vector.extract_strided_slice %0 {offsets = [2, 0, 0], sizes = [1, 8, 128], strides = [1, 1, 1]} : vector<4x8x128xf32> to vector<1x8x128xf32>
    %40 = vector.shape_cast %39 : vector<1x8x128xf32> to vector<8x128xf32>
    %41 = arith.addf %26, %40 : vector<8x128xf32>
    %c2_i32 = arith.constant 2 : i32
    %42 = vector.broadcast %c2_i32 : i32 to vector<8x128xi32>
    %43 = arith.cmpi sge, %1, %42 : vector<8x128xi32>
    %cst_11 = arith.constant 1.000000e+00 : f32
    %44 = vector.broadcast %cst_11 : f32 to vector<8x128xf32>
    %45 = arith.subf %44, %41 : vector<8x128xf32>
    %46 = arith.select %43, %41, %45 : vector<8x128xi1>, vector<8x128xf32>
    %cst_12 = arith.constant 0.000000e+00 : f32
    %47 = vector.broadcast %cst_12 : f32 to vector<8x128xf32>
    %48 = arith.maximumf %46, %47 : vector<8x128xf32>
    %cst_13 = arith.constant 9.99999971E-10 : f32
    %49 = vector.broadcast %cst_13 : f32 to vector<8x128xf32>
    %50 = arith.addf %48, %49 : vector<8x128xf32>
    %51 = vector.extract_strided_slice %0 {offsets = [3, 0, 0], sizes = [1, 8, 128], strides = [1, 1, 1]} : vector<4x8x128xf32> to vector<1x8x128xf32>
    %52 = vector.shape_cast %51 : vector<1x8x128xf32> to vector<8x128xf32>
    %53 = arith.addf %41, %52 : vector<8x128xf32>
    %c3_i32 = arith.constant 3 : i32
    %54 = vector.broadcast %c3_i32 : i32 to vector<8x128xi32>
    %55 = arith.cmpi sge, %1, %54 : vector<8x128xi32>
    %cst_14 = arith.constant 1.000000e+00 : f32
    %56 = vector.broadcast %cst_14 : f32 to vector<8x128xf32>
    %57 = arith.subf %56, %53 : vector<8x128xf32>
    %58 = arith.select %55, %53, %57 : vector<8x128xi1>, vector<8x128xf32>
    %cst_15 = arith.constant 0.000000e+00 : f32
    %59 = vector.broadcast %cst_15 : f32 to vector<8x128xf32>
    %60 = arith.maximumf %58, %59 : vector<8x128xf32>
    %cst_16 = arith.constant 9.99999971E-10 : f32
    %61 = vector.broadcast %cst_16 : f32 to vector<8x128xf32>
    %62 = arith.addf %60, %61 : vector<8x128xf32>
    %63 = arith.mulf %50, %62 : vector<8x128xf32>
    %64 = math.log %63 : vector<8x128xf32>
    %65 = arith.addf %38, %64 : vector<8x128xf32>
    %cst_17 = arith.constant 0.000000e+00 : f32
    %66 = vector.broadcast %cst_17 : f32 to vector<8x128xf32>
    %67 = arith.select %11, %65, %66 : vector<8x128xi1>, vector<8x128xf32>
    %68 = vector.shape_cast %67 : vector<8x128xf32> to vector<1x8x128xf32>
    %cst_18 = arith.constant dense<0.000000e+00> : vector<8x128xf32>
    %69 = vector.multi_reduction <add>, %68, %cst_18 [0] : vector<1x8x128xf32> to vector<8x128xf32>
    %70 = vector.shape_cast %69 : vector<8x128xf32> to vector<1x8x128xf32>
    %c0_19 = arith.constant 0 : index
    %c0_20 = arith.constant 0 : index
    %c0_21 = arith.constant 0 : index
    %71 = vector.load %arg3[%c0_19, %c0_20, %c0_21] : memref<1x8x128xf32, #tpu.memory_space<vmem>>, vector<1x8x128xf32>
    tpu.vector_store %arg3[%c0_19, %c0_20, %c0_21], %70 {strides = array<i32>} : memref<1x8x128xf32, #tpu.memory_space<vmem>>, vector<1x8x128xf32>,
    return
  }
  func.func @transform_0(%arg0: i32) -> (i32, i32, i32) {
    %c0_i32 = arith.constant 0 : i32
    %c0_i32_0 = arith.constant 0 : i32
    %c0_i32_1 = arith.constant 0 : i32
    return %c0_i32, %arg0, %c0_i32_0 : i32, i32, i32
  }
  func.func @transform_1(%arg0: i32) -> (i32, i32) {
    %c0_i32 = arith.constant 0 : i32
    %c0_i32_0 = arith.constant 0 : i32
    return %arg0, %c0_i32 : i32, i32
  }
  func.func @transform_2(%arg0: i32) -> (i32, i32, i32) {
    %c0_i32 = arith.constant 0 : i32
    %c0_i32_0 = arith.constant 0 : i32
    %c0_i32_1 = arith.constant 0 : i32
    return %arg0, %c0_i32, %c0_i32_0 : i32, i32, i32
  }
}

</mosaic_0001>

<bundles_post_ra>
// kernel: tpu_custom_call.1
= control target key start
LH: loop header
LB: loop body
LE: loop exit
PB: predicated region body
PF: predicated region fallthrough
CT: control target
= control target key end

     0   :  { %7 = vsyncpa [#allocation3], 0  ;;  %s240_s0 = inlined_call_operand.hbm [shape: f32[4,8,128], index: 0, kind: input, shape index: {}]   ;;  %s241_s1 = inlined_call_operand.hbm [shape: s32[8,128], index: 1, kind: input, shape index: {}]   ;;  %s242_s2 = inlined_call_operand.hbm [shape: f32[1,8,128], index: 2, kind: output, shape index: {}]  }
   0x1   :  { %8 = vsyncpa [#allocation6], 0 }
   0x2   :  { %9 = vsyncpa [#allocation4], 0  ;;  %s184_s9 = smov [#allocation2]   ;;  %s112_s13 = scalar_lea.hbm %s240_s0, 512 }
   0x3   :  { %s15_s10 = sshll.u32 %s184_s9, 4  ;;  %p113_p0 = scmp.ne.s32.totalorder %s240_s0, %s112_s13  ;;  %s16_s10 = int_to_ptr.vmem [resolvable:$true] %s15_s10 }
   0x4   :  { %p116_p1 = scmp.lt.u32.totalorder %s112_s13, %s240_s0 }
   0x6   :  { %p118_p2 = pnand %p116_p1, %p113_p0 }
   0x8   :  { %121 = shalt.err (!%p118_p2)
}
   0x9   :  { %s122_s18 = scalar_lea.vmem %s16_s10, 512  ;;  %p127_p4 = scmp.lt.s32.totalorder %s16_s10, %s16_s10 }
   0xa   :  { %p123_p3 = scmp.ne.s32.totalorder %s16_s10, %s122_s18  ;;  %p128_p5 = scmp.lt.s32.totalorder %s122_s18, %s122_s18 }
   0xc   :  { %p129_p6 = por %p128_p5, %p127_p4 }
   0xe   :  { %p130_p7 = pnand %p129_p6, %p123_p3 }
  0x10   :  { %133 = shalt.err (!%p130_p7)
}
  0x11   :  { %s185_s19 = smov 128   ;;  %s186_s20 = smov 8  }
  0x12   :  { %21 = dma.hbm_to_vmem [thread:$0]  %s240_s0, 512, %s16_s10, [#allocation3], %s185_s19, %s185_s19, %s186_s20  }
  0x13   :  { %s187_s23 = smov [#allocation5]   ;;  %s134_s27 = scalar_lea.hbm %s241_s1, 128 }
  0x14   :  { %s28_s24 = sshll.u32 %s187_s23, 4  ;;  %p135_p8 = scmp.ne.s32.totalorder %s241_s1, %s134_s27  ;;  %s29_s24 = int_to_ptr.vmem [resolvable:$true] %s28_s24 }
  0x15   :  { %p138_p9 = scmp.lt.u32.totalorder %s134_s27, %s241_s1 }
  0x17   :  { %p140_p10 = pnand %p138_p9, %p135_p8 }
  0x19   :  { %143 = shalt.err (!%p140_p10)
}
  0x1a   :  { %s144_s4 = scalar_lea.vmem %s29_s24, 128  ;;  %p149_p12 = scmp.lt.s32.totalorder %s29_s24, %s29_s24 }
  0x1b   :  { %p145_p11 = scmp.ne.s32.totalorder %s29_s24, %s144_s4  ;;  %p150_p13 = scmp.lt.s32.totalorder %s144_s4, %s144_s4 }
  0x1d   :  { %p151_p0 = por %p150_p13, %p149_p12 }
  0x1f   :  { %p152_p1 = pnand %p151_p0, %p145_p11 }
  0x21   :  { %155 = shalt.err (!%p152_p1)
}
  0x22   :  { %31 = dma.hbm_to_vmem [thread:$0]  %s241_s1, 128, %s29_s24, [#allocation6]  }
  0x23   :  { %178 = dma.done.wait [#allocation3], 512  }
  0x24   :  { %179 = vsyncadd [#allocation3], 4294966784 }
  0x25   :  { %180 = dma.done.wait [#allocation6], 128  }
  0x26   :  { %181 = vsyncadd [#allocation6], 4294967168  ;;  %v38_v0 = vld [vmem:[#allocation2] sm:$0xff]  ;;  %v39_v1 = vld [vmem:[#allocation2 + $0x8] sm:$0xff]  ;;  %v43_v24 = vlaneseq  ;;  %s188_s1 = smov [#allocation7]  }
  0x27   :  { %v40_v2 = vld [vmem:[#allocation2 + $0x10] sm:$0xff]  ;;  %v42_v3 = vld [vmem:[#allocation5] sm:$0xff]  ;;  %v54_v4 = vsub.f32 1.0, %v38_v0  ;;  %v58_v5 = vadd.f32 %v39_v1, %v38_v0  ;;  %v41_v6 = vld [vmem:[#allocation2 + $0x18] sm:$0xff]  ;;  %s93_s6 = sshll.u32 %s188_s1, 4  ;;  %s94_s6 = int_to_ptr.vmem [resolvable:$true] %s93_s6 }
  0x28   :  { %vm53_vm0 = vcmp.ge.s32.totalorder %v42_v3, 0  ;;  %vm59_vm1 = vcmp.ge.s32.totalorder %v42_v3, 1  ;;  %vm69_vm2 = vcmp.ge.s32.totalorder %v42_v3, 2  ;;  %vm75_vm3 = vcmp.ge.s32.totalorder %v42_v3, 3  ;;  %s156_s7 = scalar_lea.vmem %s94_s6, 128  ;;  %p161_p3 = scmp.lt.s32.totalorder %s94_s6, %s94_s6 }
  0x29   :  { %v55_v7 = vsel %vm53_vm0, %v38_v0, %v54_v4  ;;  %v60_v8 = vsub.f32 1.0, %v58_v5  ;;  %v68_v9 = vadd.f32 %v58_v5, %v40_v2  ;;  %v44_v27 = vshrl.u32 %v43_v24, 7  ;;  %p157_p2 = scmp.ne.s32.totalorder %s94_s6, %s156_s7  ;;  %p162_p4 = scmp.lt.s32.totalorder %s156_s7, %s156_s7 }
  0x2a   :  { %v56_v10 = vmax.f32 %v55_v7, 0.0  ;;  %v46_v28 = vand.u32 127, %v43_v24 }
  0x2b   :  { %v61_v11 = vsel %vm59_vm1, %v58_v5, %v60_v8  ;;  %v70_v12 = vsub.f32 1.0, %v68_v9  ;;  %v74_v13 = vadd.f32 %v68_v9, %v41_v6  ;;  %v50_v29 = vmul.u32 128, %v44_v27  ;;  %p163_p5 = por %p162_p4, %p161_p3 }
  0x2c   :  { %v57_v14 = vadd.f32 1e-09, %v56_v10  ;;  %v62_v15 = vmax.f32 %v61_v11, 0.0 }
  0x2d   :  { %v71_v16 = vsel %vm69_vm2, %v68_v9, %v70_v12  ;;  %v76_v17 = vsub.f32 1.0, %v74_v13  ;;  %v51_v31 = vadd.s32 %v50_v29, %v46_v28  ;;  %p164_p6 = pnand %p163_p5, %p157_p2 }
  0x2e   :  { %v63_v18 = vadd.f32 1e-09, %v62_v15  ;;  %v72_v19 = vmax.f32 %v71_v16, 0.0 }
  0x2f   :  { %v77_v20 = vsel %vm75_vm3, %v74_v13, %v76_v17  ;;  %vm52_vm4 = vcmp.lt.s32.totalorder %v51_v31, 8 }
  0x30   :  { %v64_v21 = vmul.f32 %v63_v18, %v57_v14  ;;  %v73_v22 = vadd.f32 1e-09, %v72_v19  ;;  %v78_v23 = vmax.f32 %v77_v20, 0.0 }
  0x32   :  { %108 = vlog2.f32 %v64_v21  ;;  %v79_v25 = vadd.f32 1e-09, %v78_v23 }
  0x34   :  { %v80_v26 = vmul.f32 %v79_v25, %v73_v22 }
  0x36   :  { %110 = vlog2.f32 %v80_v26 }
  0x3c   :  { %v109_v30 = vpop.eup %108 }
  0x3d   :  { %v66_v32 = vmul.f32 0.6931472, %v109_v30 }
  0x40   :  { %v111_v33 = vpop.eup %110 }
  0x41   :  { %v82_v34 = vmul.f32 0.6931472, %v111_v33 }
  0x43   :  { %v83_v35 = vadd.f32 %v82_v34, %v66_v32 }
  0x45   :  { %v84_v36 = vsel %vm52_vm4, %v83_v35, 0.0 }
  0x46   :  { %86 = vst [vmem:[#allocation7] sm:$0xff] %v84_v36 }
  0x47   :  { %167 = shalt.err (!%p164_p6)
}
  0x48   :  { %s168_s10 = scalar_lea.hbm %s242_s2, 128 }
  0x49   :  { %p169_p7 = scmp.ne.s32.totalorder %s242_s2, %s168_s10  ;;  %p172_p8 = scmp.lt.u32.totalorder %s168_s10, %s242_s2 }
  0x4b   :  { %p174_p9 = pnand %p172_p8, %p169_p7 }
  0x4d   :  { %177 = shalt.err (!%p174_p9)
}
  0x4e   :  { %96 = dma.vmem_to_hbm [thread:$0]  %s94_s6, 128, %s242_s2, [#allocation4]  }
  0x4f   :  { %182 = dma.done.wait [#allocation4], 128  }
  0x50   :  { %183 = vsyncadd [#allocation4], 4294967168 }
  0x51   :  { %100 = vsyncpa [#allocation3], 1 }
  0x52   :  { %101 = vsyncpa [#allocation6], 1 }
  0x53   :  { %102 = vsyncpa [#allocation4], 1 }

</bundles_post_ra>
